<compile_context>
chip_gen: v7x
topology: tpu7x:2x2x1
jax: 0.10.0
libtpu: 0.0.40
codegen_flags: <defaults>
</compile_context>

<pallas_src>
import math

import jax
import jax.numpy as jnp
from jax import lax
from jax.experimental import pallas as pl


def mhoa_kernel(x_ref, wt_ref, out_ref):
    """Single-invocation kernel (no grid).

    x_ref   : (B*S, D)  input, batch rows stacked along the sublane axis
    wt_ref  : (D, H)    attention_weights.weight, transposed
    out_ref : (B, H*D)  lane-dense output row per batch element
    """
    B, HD = out_ref.shape
    BS, D = x_ref.shape
    H = wt_ref.shape[-1]
    S = BS // B

    x = x_ref[...]                                                   # (B*S, D)

    # Score projection fused across the batch: ONE (B*S, D) @ (D, H) MXU matmul.
    scores = jnp.dot(x, wt_ref[...],
                     preferred_element_type=jnp.float32,
                     precision=lax.Precision.HIGHEST)                # (B*S, H)
    # NOTE: the Linear bias is intentionally omitted — softmax over the
    # sequence axis is invariant to a per-head additive constant.

    # B and H are tiny static Python ints -> these loops fully unroll at trace
    # time; there is no grid / scf loop overhead.
    for b in range(B):
        sc = scores[b * S:(b + 1) * S, :]                            # (S, H)
        xb = x[b * S:(b + 1) * S, :]                                 # (S, D)

        # Numerically-stable softmax over the sequence axis (dim=1 in PyTorch),
        # with an exact divide (no approx reciprocal).
        m = jnp.max(sc, axis=0, keepdims=True)                       # (1, H)
        e = jnp.exp(sc - m)                                          # (S, H)
        probs = e / jnp.sum(e, axis=0, keepdims=True)                # (S, H)

        # out[h, :] = sum_s probs[s, h] * x[s, :] -> one MXU contraction
        # (replaces the per-head python loop of the PyTorch module).
        out_hd = lax.dot_general(probs, xb,
                                 dimension_numbers=(((0,), (0,)), ((), ())),
                                 preferred_element_type=jnp.float32,
                                 precision=lax.Precision.HIGHEST)    # (H, D)

        # Head concatenation: static lane-sliced stores into the (B, H*D)
        # output block.  The output block itself is lane-dense (last dim 128),
        # so the HBM writeback DMA is unmasked/dense.
        for h in range(H):
            out_ref[b:b + 1, h * D:(h + 1) * D] = (
                out_hd[h:h + 1, :].astype(out_ref.dtype))


def multi_head_output_attention(x, weight, bias=None):
    """x: (B, S, D); weight: (H, D); bias: (H,) [unused — cancels in softmax].

    Returns (B, H*D), matching the PyTorch module's forward exactly.
    """
    B, S, D = x.shape
    H = weight.shape[0]
    del bias  # softmax over S is shift-invariant per head -> bias is a no-op.

    x2 = x.reshape(B * S, D)   # contiguous, metadata-only reshape in XLA (free)
    wt = weight.T              # (D, H) so the kernel does x @ wt

    return pl.pallas_call(
        mhoa_kernel,
        out_shape=jax.ShapeDtypeStruct((B, H * D), x.dtype),
        in_specs=[
            pl.BlockSpec((B * S, D), lambda: (0, 0)),
            pl.BlockSpec((D, H), lambda: (0, 0)),
        ],
        out_specs=pl.BlockSpec((B, H * D), lambda: (0, 0)),
    )(x2, wt)


def reference(x, weight, bias):
    """Pure-JAX mirror of the PyTorch forward (bias included, exact math)."""
    B, S, D = x.shape
    H = weight.shape[0]
    scores = jnp.einsum('bsd,hd->bsh', x, weight,
                        precision=lax.Precision.HIGHEST) + bias      # Linear
    probs = jax.nn.softmax(scores, axis=1)                           # softmax over S
    out = jnp.einsum('bsh,bsd->bhd', probs, x,
                     precision=lax.Precision.HIGHEST)                # weighted sum
    return out.reshape(B, H * D)                                     # concat heads


if __name__ == "__main__":
    # Module hyper-params: hidden_dim=32, num_heads=4; small deterministic inputs.
    hidden_dim, num_heads = 32, 4
    B, S = 2, 8

    key = jax.random.PRNGKey(0)
    kx, kw, kb = jax.random.split(key, 3)

    x = jax.random.normal(kx, (B, S, hidden_dim), dtype=jnp.float32)
    bound = 1.0 / math.sqrt(hidden_dim)     # nn.Linear default init range
    weight = jax.random.uniform(kw, (num_heads, hidden_dim), jnp.float32, -bound, bound)
    bias = jax.random.uniform(kb, (num_heads,), jnp.float32, -bound, bound)

    fwd = jax.jit(multi_head_output_attention)
    out = jax.block_until_ready(fwd(x, weight, bias))

    ref = reference(x, weight, bias)
    assert out.shape == (B, num_heads * hidden_dim)
    # Exact softmax divide + f32 MXU accumulation -> tight tolerance
    # (the previous 2e-3 was only needed for the approx reciprocal).
    assert jnp.allclose(out, ref, atol=1e-4, rtol=1e-4), "Pallas kernel mismatch vs reference"

    print("KERNEL_OK")
</pallas_src>

<mosaic_0001>
module attributes {stable_mosaic.version = 11 : i64} {
  func.func @mhoa_kernel(%arg0: memref<16x32xf32, #tpu.memory_space<vmem>>, %arg1: memref<32x4xf32, #tpu.memory_space<vmem>>, %arg2: memref<2x128xf32, #tpu.memory_space<vmem>>) attributes {dimension_semantics = [], scalar_prefetch = 0 : i64, scratch_operands = 0 : i64, tpu.core_type = #tpu.core_type<tc>} {
    %c0 = arith.constant 0 : index
    %c0_0 = arith.constant 0 : index
    %0 = vector.load %arg0[%c0, %c0_0] : memref<16x32xf32, #tpu.memory_space<vmem>>, vector<16x32xf32>
    %c0_1 = arith.constant 0 : index
    %c0_2 = arith.constant 0 : index
    %1 = vector.load %arg1[%c0_1, %c0_2] : memref<32x4xf32, #tpu.memory_space<vmem>>, vector<32x4xf32>
    %cst = arith.constant dense<0.000000e+00> : vector<16x4xf32>
    %2 = tpu.matmul %0, %1, %cst {dimension_numbers = #tpu.dot_dimension_numbers<[1], [0], [0], [1], [0, 0, 1, 1], [], []>, precision = #tpu.contract_precision<fp32>} : vector<16x32xf32>, vector<32x4xf32>, vector<16x4xf32> -> vector<16x4xf32>
    %3 = vector.extract_strided_slice %2 {offsets = [0, 0], sizes = [8, 4], strides = [1, 1]} : vector<16x4xf32> to vector<8x4xf32>
    %4 = vector.extract_strided_slice %0 {offsets = [0, 0], sizes = [8, 32], strides = [1, 1]} : vector<16x32xf32> to vector<8x32xf32>
    %cst_3 = arith.constant dense<0xFF800000> : vector<4xf32>
    %5 = vector.multi_reduction <maximumf>, %3, %cst_3 [0] : vector<8x4xf32> to vector<4xf32>
    %6 = vector.shape_cast %5 : vector<4xf32> to vector<1x4xf32>
    %7 = vector.broadcast %6 : vector<1x4xf32> to vector<8x4xf32>
    %8 = arith.subf %3, %7 : vector<8x4xf32>
    %9 = math.exp %8 : vector<8x4xf32>
    %cst_4 = arith.constant dense<0.000000e+00> : vector<4xf32>
    %10 = vector.multi_reduction <add>, %9, %cst_4 [0] : vector<8x4xf32> to vector<4xf32>
    %11 = vector.shape_cast %10 : vector<4xf32> to vector<1x4xf32>
    %12 = vector.broadcast %11 : vector<1x4xf32> to vector<8x4xf32>
    %13 = arith.divf %9, %12 : vector<8x4xf32>
    %cst_5 = arith.constant dense<0.000000e+00> : vector<4x32xf32>
    %14 = tpu.matmul %13, %4, %cst_5 {dimension_numbers = #tpu.dot_dimension_numbers<[0], [0], [1], [1], [0, 1, 1, 1], [], []>, precision = #tpu.contract_precision<fp32>} : vector<8x4xf32>, vector<8x32xf32>, vector<4x32xf32> -> vector<4x32xf32>
    %15 = vector.extract_strided_slice %14 {offsets = [0, 0], sizes = [1, 32], strides = [1, 1]} : vector<4x32xf32> to vector<1x32xf32>
    %c0_6 = arith.constant 0 : index
    %c0_7 = arith.constant 0 : index
    %16 = vector.load %arg2[%c0_6, %c0_7] : memref<2x128xf32, #tpu.memory_space<vmem>>, vector<1x32xf32>
    tpu.vector_store %arg2[%c0_6, %c0_7], %15 {strides = array<i32>} : memref<2x128xf32, #tpu.memory_space<vmem>>, vector<1x32xf32>,
    %17 = vector.extract_strided_slice %14 {offsets = [1, 0], sizes = [1, 32], strides = [1, 1]} : vector<4x32xf32> to vector<1x32xf32>
    %c0_8 = arith.constant 0 : index
    %c32 = arith.constant 32 : index
    %18 = vector.load %arg2[%c0_8, %c32] : memref<2x128xf32, #tpu.memory_space<vmem>>, vector<1x32xf32>
    tpu.vector_store %arg2[%c0_8, %c32], %17 {strides = array<i32>} : memref<2x128xf32, #tpu.memory_space<vmem>>, vector<1x32xf32>,
    %19 = vector.extract_strided_slice %14 {offsets = [2, 0], sizes = [1, 32], strides = [1, 1]} : vector<4x32xf32> to vector<1x32xf32>
    %c0_9 = arith.constant 0 : index
    %c64 = arith.constant 64 : index
    %20 = vector.load %arg2[%c0_9, %c64] : memref<2x128xf32, #tpu.memory_space<vmem>>, vector<1x32xf32>
    tpu.vector_store %arg2[%c0_9, %c64], %19 {strides = array<i32>} : memref<2x128xf32, #tpu.memory_space<vmem>>, vector<1x32xf32>,
    %21 = vector.extract_strided_slice %14 {offsets = [3, 0], sizes = [1, 32], strides = [1, 1]} : vector<4x32xf32> to vector<1x32xf32>
    %c0_10 = arith.constant 0 : index
    %c96 = arith.constant 96 : index
    %22 = vector.load %arg2[%c0_10, %c96] : memref<2x128xf32, #tpu.memory_space<vmem>>, vector<1x32xf32>
    tpu.vector_store %arg2[%c0_10, %c96], %21 {strides = array<i32>} : memref<2x128xf32, #tpu.memory_space<vmem>>, vector<1x32xf32>,
    %23 = vector.extract_strided_slice %2 {offsets = [8, 0], sizes = [8, 4], strides = [1, 1]} : vector<16x4xf32> to vector<8x4xf32>
    %24 = vector.extract_strided_slice %0 {offsets = [8, 0], sizes = [8, 32], strides = [1, 1]} : vector<16x32xf32> to vector<8x32xf32>
    %cst_11 = arith.constant dense<0xFF800000> : vector<4xf32>
    %25 = vector.multi_reduction <maximumf>, %23, %cst_11 [0] : vector<8x4xf32> to vector<4xf32>
    %26 = vector.shape_cast %25 : vector<4xf32> to vector<1x4xf32>
    %27 = vector.broadcast %26 : vector<1x4xf32> to vector<8x4xf32>
    %28 = arith.subf %23, %27 : vector<8x4xf32>
    %29 = math.exp %28 : vector<8x4xf32>
    %cst_12 = arith.constant dense<0.000000e+00> : vector<4xf32>
    %30 = vector.multi_reduction <add>, %29, %cst_12 [0] : vector<8x4xf32> to vector<4xf32>
    %31 = vector.shape_cast %30 : vector<4xf32> to vector<1x4xf32>
    %32 = vector.broadcast %31 : vector<1x4xf32> to vector<8x4xf32>
    %33 = arith.divf %29, %32 : vector<8x4xf32>
    %cst_13 = arith.constant dense<0.000000e+00> : vector<4x32xf32>
    %34 = tpu.matmul %33, %24, %cst_13 {dimension_numbers = #tpu.dot_dimension_numbers<[0], [0], [1], [1], [0, 1, 1, 1], [], []>, precision = #tpu.contract_precision<fp32>} : vector<8x4xf32>, vector<8x32xf32>, vector<4x32xf32> -> vector<4x32xf32>
    %35 = vector.extract_strided_slice %34 {offsets = [0, 0], sizes = [1, 32], strides = [1, 1]} : vector<4x32xf32> to vector<1x32xf32>
    %c1 = arith.constant 1 : index
    %c0_14 = arith.constant 0 : index
    %36 = vector.load %arg2[%c1, %c0_14] : memref<2x128xf32, #tpu.memory_space<vmem>>, vector<1x32xf32>
    tpu.vector_store %arg2[%c1, %c0_14], %35 {strides = array<i32>} : memref<2x128xf32, #tpu.memory_space<vmem>>, vector<1x32xf32>,
    %37 = vector.extract_strided_slice %34 {offsets = [1, 0], sizes = [1, 32], strides = [1, 1]} : vector<4x32xf32> to vector<1x32xf32>
    %c1_15 = arith.constant 1 : index
    %c32_16 = arith.constant 32 : index
    %38 = vector.load %arg2[%c1_15, %c32_16] : memref<2x128xf32, #tpu.memory_space<vmem>>, vector<1x32xf32>
    tpu.vector_store %arg2[%c1_15, %c32_16], %37 {strides = array<i32>} : memref<2x128xf32, #tpu.memory_space<vmem>>, vector<1x32xf32>,
    %39 = vector.extract_strided_slice %34 {offsets = [2, 0], sizes = [1, 32], strides = [1, 1]} : vector<4x32xf32> to vector<1x32xf32>
    %c1_17 = arith.constant 1 : index
    %c64_18 = arith.constant 64 : index
    %40 = vector.load %arg2[%c1_17, %c64_18] : memref<2x128xf32, #tpu.memory_space<vmem>>, vector<1x32xf32>
    tpu.vector_store %arg2[%c1_17, %c64_18], %39 {strides = array<i32>} : memref<2x128xf32, #tpu.memory_space<vmem>>, vector<1x32xf32>,
    %41 = vector.extract_strided_slice %34 {offsets = [3, 0], sizes = [1, 32], strides = [1, 1]} : vector<4x32xf32> to vector<1x32xf32>
    %c1_19 = arith.constant 1 : index
    %c96_20 = arith.constant 96 : index
    %42 = vector.load %arg2[%c1_19, %c96_20] : memref<2x128xf32, #tpu.memory_space<vmem>>, vector<1x32xf32>
    tpu.vector_store %arg2[%c1_19, %c96_20], %41 {strides = array<i32>} : memref<2x128xf32, #tpu.memory_space<vmem>>, vector<1x32xf32>,
    return
  }
}

</mosaic_0001>

<bundles_post_ra>
// kernel: multi_head_output_attention.1
= control target key start
LH: loop header
LB: loop body
LE: loop exit
PB: predicated region body
PF: predicated region fallthrough
CT: control target
= control target key end

     0   :  { %vm18_vm0 = vcmask 261120   ;;  %s2034_s0 = inlined_call_operand.vmem [shape: f32[16,32], index: 0, kind: input, shape index: {}]   ;;  %s2035_s1 = inlined_call_operand.vmem [shape: f32[32,4], index: 1, kind: input, shape index: {}]   ;;  %s2036_s2 = inlined_call_operand.hbm [shape: f32[2,128], index: 2, kind: output, shape index: {}]  }
   0x1   :  { %v14_v0 = vld [vmem:[%s2035_s1] sm:$0xff]  ;;  %v15_v1 = vld [vmem:[%s2035_s1 + $0x8] sm:$0xff]  ;;  %v16_v2 = vld [vmem:[%s2035_s1 + $0x10] sm:$0xff] }
   0x2   :  { %v26_v3 = vand.u32 4294901760, %v14_v0  ;;  %v29_v4 = vand.u32 4294901760, %v15_v1  ;;  %v17_v5 = vld [vmem:[%s2035_s1 + $0x18] sm:$0xff]  ;;  %v32_v6 = vand.u32 4294901760, %v16_v2  ;;  %v1939_v7 = vld [vmem:[%s2034_s0] sm:$0xff]  ;;  %v1944_v8 = vld [vmem:[%s2034_s0 + $0x8] sm:$0xff] }
   0x3   :  { %v35_v9 = vand.u32 4294901760, %v17_v5  ;;  %v20_v10 = vsel %vm18_vm0, %v1939_v7, 0  ;;  %v23_v11 = vsel %vm18_vm0, %v1944_v8, 0 }
   0x4   :  { %7 = vsyncpa [#allocation3], 0  ;;  %v1948_v12 = vpack.c.bf16 %v29_v4, %v26_v3  ;;  %v1950_v13 = vand.u32 4294901760, %v20_v10  ;;  %v1952_v14 = vand.u32 4294901760, %v23_v11  ;;  %v116_v15 = vsub.f32 %v14_v0, %v26_v3  ;;  %s1905_s0 = smov 64   ;;  %s1906_s1 = smov 32  }
   0x5   :  { %v1954_v16 = vpack.c.bf16 %v35_v9, %v32_v6  ;;  %v123_v17 = vsub.f32 %v15_v1, %v29_v4  ;;  %v130_v18 = vsub.f32 %v16_v2, %v32_v6  ;;  %v137_v19 = vsub.f32 %v17_v5, %v35_v9  ;;  %s1907_s21 = smov 96   ;;  %s1908_s22 = smov [#allocation2]  }
   0x6   :  { %1788 = vmatprep.subr.bf16.mxu0 %v1948_v12  ;;  %v95_v20 = vsub.f32 %v20_v10, %v1950_v13  ;;  %v105_v21 = vsub.f32 %v23_v11, %v1952_v14  ;;  %v117_v22 = vand.u32 4294901760, %v116_v15  ;;  %vm553_vm1 = vcmask 31744   ;;  %s1593_s23 = sshll.u32 %s1908_s22, 4  ;;  %s1594_s23 = int_to_ptr.vmem [resolvable:$true] %s1593_s23 }
   0x7   :  { %1790 = vmatpush3.bf16.msra.mxu0 %v1948_v12  ;;  %v124_v23 = vand.u32 4294901760, %v123_v17  ;;  %v131_v24 = vand.u32 4294901760, %v130_v18  ;;  %v138_v25 = vand.u32 4294901760, %v137_v19  ;;  %v1803_v42 = vpack.c.bf16 %v123_v17, %v116_v15  ;;  %s1879_s24 = scalar_lea.vmem %s1594_s23, 32  ;;  %p1884_p1 = scmp.lt.s32.totalorder %s1594_s23, %s1594_s23 }
   0x8   :  { %1792 = vmatprep.subr.bf16.mxu0 %v1954_v16  ;;  %v96_v26 = vand.u32 4294901760, %v95_v20  ;;  %v106_v27 = vand.u32 4294901760, %v105_v21  ;;  %v118_v28 = vsub.f32 %v116_v15, %v117_v22  ;;  %v1807_v43 = vpack.c.bf16 %v137_v19, %v130_v18  ;;  %p1880_p0 = scmp.ne.s32.totalorder %s1594_s23, %s1879_s24  ;;  %p1885_p2 = scmp.lt.s32.totalorder %s1879_s24, %s1879_s24 }
   0x9   :  { %v125_v29 = vsub.f32 %v123_v17, %v124_v23  ;;  %v132_v30 = vsub.f32 %v130_v18, %v131_v24  ;;  %v139_v31 = vsub.f32 %v137_v19, %v138_v25  ;;  %v1819_v44 = vpack.c.bf16 %v124_v23, %v117_v22 }
   0xa   :  { %v97_v32 = vsub.f32 %v95_v20, %v96_v26  ;;  %v107_v33 = vsub.f32 %v105_v21, %v106_v27  ;;  %v119_v34 = vand.u32 4294901760, %v118_v28  ;;  %v1823_v45 = vpack.c.bf16 %v138_v25, %v131_v24  ;;  %p1886_p3 = por %p1885_p2, %p1884_p1 }
   0xb   :  { %1794 = vmatpush3.bf16.msra.mxu0 %v1954_v16  ;;  %v126_v35 = vand.u32 4294901760, %v125_v29  ;;  %v133_v36 = vand.u32 4294901760, %v132_v30  ;;  %v140_v37 = vand.u32 4294901760, %v139_v31  ;;  %v610_v24 = vand.u32 4294901760, %v1939_v7 }
   0xc   :  { %v98_v38 = vand.u32 4294901760, %v97_v32  ;;  %v108_v39 = vand.u32 4294901760, %v107_v33  ;;  %v1903_v25 = vmov 0.0   ;;  %vm1904_vm2 = vmmov 0   ;;  %p1887_p4 = pnand %p1886_p3, %p1880_p0 }
   0xd   :  { %v1795_v40 = vpack.c.bf16 %v126_v35, %v119_v34  ;;  %v1799_v41 = vpack.c.bf16 %v140_v37, %v133_v36  ;;  %1727 = vmatprep.subr.mxu1 %v1903_v25  ;;  %1729 = vmatprep.mubr.msk.f32.mxu1 %vm1904_vm2, %v1903_v25  ;;  %vm605_vm3 = vcmask 64512   ;;  %vm1055_vm4 = vcmask 253952  }
   0xe   :  { %1669 = vmatprep.mubr.f32.mxu0 %v98_v38  ;;  %1728 = vmatpush3.msra.mxu1 %v610_v24  ;;  %v1128_v38 = vand.u32 4294901760, %v1944_v8  ;;  %vm1061_vm5 = vcmask 517377   ;;  %vm1066_vm6 = vcmask 780802   ;;  %vm1071_vm7 = vcmask 1044227  }
   0xf   :  { %1670 = vmatmul.mubr.f32.vlgmr.msra.gmra.mrb[0].mxu0 %v108_v39  ;;  %1796 = vmatprep.subr.bf16.mxu0 %v1795_v40 }
  0x10   :  { %1798 = vmatpush3.bf16.msra.mxu0 %v1795_v40  ;;  %1680 = vmatprep.mubr.f32.mxu0 %v1950_v13  ;;  %v1205_v40 = vsub.f32 %v1944_v8, %v1128_v38 }
  0x11   :  { %1800 = vmatprep.subr.bf16.mxu0 %v1799_v41  ;;  %1732 = vmatprep.subr.mxu1 %v1903_v25 }
  0x14   :  { %1802 = vmatpush3.bf16.msra.mxu0 %v1799_v41 }
  0x15   :  { %1804 = vmatprep.subr.bf16.mxu0 %v1803_v42 }
  0x17   :  { %1681 = vmatmul.mubr.f32.vlgmr.msra.gmra.mrb[0].mxu0 %v1952_v14 }
  0x18   :  { %1806 = vmatpush3.bf16.msra.mxu0 %v1803_v42  ;;  %1691 = vmatprep.mubr.f32.mxu0 %v95_v20  ;;  %v1206_v42 = vand.u32 4294901760, %v1205_v40 }
  0x19   :  { %1808 = vmatprep.subr.bf16.mxu0 %v1807_v43 }
  0x1c   :  { %1810 = vmatpush3.bf16.msra.mxu0 %v1807_v43 }
  0x1d   :  { %1812 = vmatprep.subr.bf16.mxu0 %v1948_v12 }
  0x1f   :  { %1692 = vmatmul.mubr.f32.vlgmr.msra.gmra.mrb[0].mxu0 %v105_v21 }
  0x20   :  { %1814 = vmatpush3.bf16.msra.mxu0 %v1948_v12  ;;  %1702 = vmatprep.mubr.f32.mxu0 %v96_v26  ;;  %v687_v26 = vsub.f32 %v1939_v7, %v610_v24 }
  0x21   :  { %1816 = vmatprep.subr.bf16.mxu0 %v1954_v16 }
  0x22   :  { %v688_v29 = vand.u32 4294901760, %v687_v26 }
  0x24   :  { %1818 = vmatpush3.bf16.msra.mxu0 %v1954_v16  ;;  %v689_v32 = vsub.f32 %v687_v26, %v688_v29 }
  0x25   :  { %1820 = vmatprep.subr.bf16.mxu0 %v1819_v44 }
  0x26   :  { %v690_v35 = vand.u32 4294901760, %v689_v32 }
  0x27   :  { %1703 = vmatmul.mubr.f32.vlgmr.msra.gmra.mrb[0].mxu0 %v106_v27 }
  0x28   :  { %1822 = vmatpush3.bf16.msra.mxu0 %v1819_v44  ;;  %1713 = vmatprep.mubr.f32.mxu0 %v1950_v13  ;;  %v1207_v44 = vsub.f32 %v1205_v40, %v1206_v42 }
  0x29   :  { %1824 = vmatprep.subr.bf16.mxu0 %v1823_v45 }
  0x2c   :  { %1826 = vmatpush3.bf16.msra.mxu0 %v1823_v45 }
  0x2d   :  { %1828 = vmatprep.subr.bf16.mxu0 %v1948_v12 }
  0x2f   :  { %1714 = vmatmul.mubr.f32.vlgmr.msra.gmra.mrb[0].mxu0 %v1952_v14 }
  0x30   :  { %1830 = vmatpush3.bf16.msra.mxu0 %v1948_v12  ;;  %1724 = vmatprep.mubr.f32.mxu0 %v1950_v13 }
  0x31   :  { %1832 = vmatprep.subr.bf16.mxu0 %v1954_v16 }
  0x34   :  { %1834 = vmatpush3.bf16.msra.mxu0 %v1954_v16 }
  0x37   :  { %1725 = vmatmul.mubr.f32.vlgmr.msra.gmra.mrb[0].mxu0 %v1952_v14 }
 0x10a   :  { %v1726_v46 = vpop.f32.mrb[0].mxu0 }
 0x10b   :  { %v1073_v47 = vsel %vm553_vm1, %v1726_v46, -inf  ;;  %v543_v48 = vpop.f32.mrb[1].mxu0 }
 0x10c   :  { %v1074_v49 = vrot.slane %v1073_v47, 4  ;;  %v554_v50 = vsel %vm553_vm1, %v543_v48, -inf }
 0x10d   :  { %v555_v51 = vrot.slane %v554_v50, 4 }
 0x10e   :  { %v1075_v52 = vmax.f32 %v1073_v47, %v1074_v49 }
 0x10f   :  { %v556_v53 = vmax.f32 %v554_v50, %v555_v51 }
 0x110   :  { %v1076_v54 = vrot.slane %v1075_v52, 2 }
 0x111   :  { %v557_v55 = vrot.slane %v556_v53, 2 }
 0x112   :  { %v1077_v56 = vmax.f32 %v1075_v52, %v1076_v54 }
 0x113   :  { %v558_v57 = vmax.f32 %v556_v53, %v557_v55 }
 0x114   :  { %v1078_v58 = vrot.slane %v1077_v56, 1 }
 0x115   :  { %v559_v59 = vrot.slane %v558_v57, 1 }
 0x116   :  { %v1079_v60 = vmax.f32 %v1077_v56, %v1078_v58 }
 0x117   :  { %v560_v61 = vmax.f32 %v558_v57, %v559_v59 }
 0x118   :  { %v1080_v62 = vsub.f32 %v1726_v46, %v1079_v60  ;;  %v1208_v46 = vand.u32 4294901760, %v1207_v44 }
 0x119   :  { %v561_v63 = vsub.f32 %v543_v48, %v560_v61 }
 0x11a   :  { %v1081_v0 = vmul.f32 1.442695, %v1080_v62 }
 0x11b   :  { %v562_v1 = vmul.f32 1.442695, %v561_v63 }
 0x11c   :  { %1871 = vpow2.f32 %v1081_v0 }
 0x11d   :  { %1873 = vpow2.f32 %v562_v1 }
 0x126   :  { %v1872_v2 = vpop.eup %1871 }
 0x127   :  { %v1874_v3 = vpop.eup %1873  ;;  %v1083_v4 = vsel %vm553_vm1, %v1872_v2, 0.0 }
 0x128   :  { %v1084_v5 = vrot.slane %v1083_v4, 4  ;;  %v564_v6 = vsel %vm553_vm1, %v1874_v3, 0.0 }
 0x129   :  { %v565_v9 = vrot.slane %v564_v6, 4 }
 0x12a   :  { %v1085_v10 = vadd.f32 %v1084_v5, %v1083_v4 }
 0x12b   :  { %v566_v11 = vadd.f32 %v565_v9, %v564_v6 }
 0x12c   :  { %v1086_v12 = vrot.slane %v1085_v10, 2 }
 0x12d   :  { %v567_v13 = vrot.slane %v566_v11, 2 }
 0x12e   :  { %v1087_v14 = vadd.f32 %v1086_v12, %v1085_v10 }
 0x12f   :  { %v568_v15 = vadd.f32 %v567_v13, %v566_v11 }
 0x130   :  { %v1088_v16 = vrot.slane %v1087_v14, 1 }
 0x131   :  { %v569_v17 = vrot.slane %v568_v15, 1 }
 0x132   :  { %v1089_v19 = vadd.f32 %v1088_v16, %v1087_v14 }
 0x133   :  { %v570_v18 = vadd.f32 %v569_v17, %v568_v15 }
 0x135   :  { %1875 = vrcp.f32 %v570_v18 }
 0x136   :  { %1877 = vrcp.f32 %v1089_v19 }
 0x13f   :  { %v1876_v20 = vpop.eup %1875 }
 0x140   :  { %v572_v21 = vmul.f32 %v1876_v20, %v1874_v3  ;;  %v1878_v22 = vpop.eup %1877 }
 0x141   :  { %v1091_v23 = vmul.f32 %v1878_v22, %v1872_v2 }
 0x142   :  { %573 = vxpose.xlu0.b32.start.end [1/1] (short) (narrow) %v572_v21, 8 }
 0x146   :  { %1092 = vxpose.xlu0.b32.start.end [1/1] (short) (narrow) %v1091_v23, 8 }
 0x1c2   :  { %v589_v27 = vpop.trf.xlu0 }
 0x1c3   :  { %v607_v28 = vsel %vm605_vm3, %v589_v27, 0 }
 0x1c4   :  { %v675_v30 = vand.u32 4294901760, %v607_v28 }
 0x1c6   :  { %v676_v31 = vsub.f32 %v607_v28, %v675_v30  ;;  %v1108_v7 = vpop.trf.xlu0 }
 0x1c7   :  { %v1125_v37 = vsel %vm605_vm3, %v1108_v7, 0 }
 0x1c8   :  { %v677_v33 = vand.u32 4294901760, %v676_v31  ;;  %v1193_v39 = vand.u32 4294901760, %v1125_v37 }
 0x1ca   :  { %v678_v34 = vsub.f32 %v676_v31, %v677_v33  ;;  %v1194_v41 = vsub.f32 %v1125_v37, %v1193_v39 }
 0x1cc   :  { %v679_v36 = vand.u32 4294901760, %v678_v34  ;;  %v1195_v43 = vand.u32 4294901760, %v1194_v41 }
 0x1ce   :  { %1730 = vmatmul.mubr.f32.vlgmr.msra.gmra.mrb[0].mxu1 %v679_v36  ;;  %v1196_v45 = vsub.f32 %v1194_v41, %v1195_v43 }
 0x1cf   :  { %1733 = vmatpush3.msra.mxu1 %v690_v35  ;;  %1734 = vmatprep.mubr.msk.f32.mxu1 %vm1904_vm2, %v1903_v25 }
 0x1d0   :  { %1737 = vmatprep.subr.mxu1 %v1903_v25  ;;  %v1197_v47 = vand.u32 4294901760, %v1196_v45 }
 0x1d6   :  { %1735 = vmatmul.mubr.f32.vlgmr.msra.gmra.mrb[0].mxu1 %v675_v30 }
 0x1d7   :  { %1738 = vmatpush3.msra.mxu1 %v687_v26  ;;  %1739 = vmatprep.mubr.msk.f32.mxu1 %vm1904_vm2, %v1903_v25 }
 0x1d8   :  { %1742 = vmatprep.subr.mxu1 %v1903_v25 }
 0x1de   :  { %1740 = vmatmul.mubr.f32.vlgmr.msra.gmra.mrb[0].mxu1 %v676_v31 }
 0x1df   :  { %1743 = vmatpush3.msra.mxu1 %v610_v24  ;;  %1744 = vmatprep.mubr.msk.f32.mxu1 %vm1904_vm2, %v1903_v25 }
 0x1e0   :  { %1747 = vmatprep.subr.mxu1 %v1903_v25 }
 0x1e6   :  { %1745 = vmatmul.mubr.f32.vlgmr.msra.gmra.mrb[0].mxu1 %v677_v33 }
 0x1e7   :  { %1748 = vmatpush3.msra.mxu1 %v688_v29  ;;  %1749 = vmatprep.mubr.msk.f32.mxu1 %vm1904_vm2, %v1903_v25 }
 0x1e8   :  { %1752 = vmatprep.subr.mxu1 %v1903_v25 }
 0x1ee   :  { %1750 = vmatmul.mubr.f32.vlgmr.msra.gmra.mrb[0].mxu1 %v675_v30 }
 0x1ef   :  { %1753 = vmatpush3.msra.mxu1 %v610_v24  ;;  %1754 = vmatprep.mubr.msk.f32.mxu1 %vm1904_vm2, %v1903_v25 }
 0x1f0   :  { %1757 = vmatprep.subr.mxu1 %v1903_v25 }
 0x1f6   :  { %1755 = vmatmul.mubr.f32.vlgmr.msra.gmra.mrb[0].mxu1 %v675_v30 }
 0x1f7   :  { %1758 = vmatpush3.msra.mxu1 %v1128_v38  ;;  %1759 = vmatprep.mubr.msk.f32.mxu1 %vm1904_vm2, %v1903_v25 }
 0x1f8   :  { %1762 = vmatprep.subr.mxu1 %v1903_v25 }
 0x1fa   :  { %1760 = vmatmul.mubr.f32.vlgmr.msra.gmra.mrb[2].mxu1 %v1197_v47 }
 0x1fb   :  { %1763 = vmatpush3.msra.mxu1 %v1208_v46  ;;  %1764 = vmatprep.mubr.msk.f32.mxu1 %vm1904_vm2, %v1903_v25 }
 0x1fc   :  { %1767 = vmatprep.subr.mxu1 %v1903_v25 }
 0x202   :  { %1765 = vmatmul.mubr.f32.vlgmr.msra.gmra.mrb[2].mxu1 %v1193_v39 }
 0x203   :  { %1768 = vmatpush3.msra.mxu1 %v1205_v40  ;;  %1769 = vmatprep.mubr.msk.f32.mxu1 %vm1904_vm2, %v1903_v25 }
 0x204   :  { %1772 = vmatprep.subr.mxu1 %v1903_v25 }
 0x20a   :  { %1770 = vmatmul.mubr.f32.vlgmr.msra.gmra.mrb[2].mxu1 %v1194_v41 }
 0x20b   :  { %1773 = vmatpush3.msra.mxu1 %v1128_v38  ;;  %1774 = vmatprep.mubr.msk.f32.mxu1 %vm1904_vm2, %v1903_v25 }
 0x20c   :  { %1777 = vmatprep.subr.mxu1 %v1903_v25 }
 0x212   :  { %1775 = vmatmul.mubr.f32.vlgmr.msra.gmra.mrb[2].mxu1 %v1195_v43 }
 0x213   :  { %1778 = vmatpush3.msra.mxu1 %v1206_v42  ;;  %1779 = vmatprep.mubr.msk.f32.mxu1 %vm1904_vm2, %v1903_v25 }
 0x214   :  { %1782 = vmatprep.subr.mxu1 %v1903_v25 }
 0x21a   :  { %1780 = vmatmul.mubr.f32.vlgmr.msra.gmra.mrb[2].mxu1 %v1193_v39 }
 0x21b   :  { %1783 = vmatpush3.msra.mxu1 %v1128_v38  ;;  %1784 = vmatprep.mubr.msk.f32.mxu1 %vm1904_vm2, %v1903_v25 }
 0x222   :  { %1785 = vmatmul.mubr.f32.vlgmr.msra.gmra.mrb[2].mxu1 %v1193_v39 }
 0x2c9   :  { %v1051_v8 = vpop.f32.mrb[0].mxu1 }
 0x2ca   :  { %1063 = vrot.lane.b32.xlu0 %v1051_v8, %s1905_s0  ;;  %1058 = vrot.lane.b32.xlu1 %v1051_v8, %s1906_s1  ;;  %v1756_v48 = vpop.f32.mrb[1].mxu1  ;;  %1056 = vst.msk [vmem:[#allocation2] sm:$0x1] %vm1055_vm4, %v1051_v8 }
 0x2ce   :  { %1068 = vrot.lane.b32.xlu1 %v1051_v8, %s1907_s21 }
 0x2f5   :  { %v1569_v49 = vpop.f32.mrb[2].mxu1 }
 0x2f6   :  { %1575 = vrot.lane.b32.xlu1 %v1569_v49, %s1906_s1  ;;  %v1786_v50 = vpop.f32.mrb[3].mxu1  ;;  %1573 = vst.msk [vmem:[#allocation2 + $0x1] sm:$0x1] %vm1055_vm4, %v1569_v49 }
 0x2fa   :  { %1579 = vrot.lane.b32.xlu1 %v1569_v49, %s1905_s0 }
 0x2fe   :  { %1583 = vrot.lane.b32.xlu1 %v1569_v49, %s1907_s21 }
 0x33c   :  { %v1059_v51 = vpop.permute.xlu1 %1058  ;;  %v1064_v52 = vpop.permute.xlu0 %1063 }
 0x33d   :  { %1062 = vst.msk [vmem:[#allocation2 - $0x1] sm:$0x2] %vm1061_vm5, %v1059_v51 }
 0x33e   :  { %1067 = vst.msk [vmem:[#allocation2 - $0x2] sm:$0x4] %vm1066_vm6, %v1064_v52 }
 0x340   :  { %v1069_v53 = vpop.permute.xlu1 %1068 }
 0x341   :  { %1072 = vst.msk [vmem:[#allocation2 - $0x3] sm:$0x8] %vm1071_vm7, %v1069_v53 }
 0x368   :  { %v1576_v54 = vpop.permute.xlu1 %1575 }
 0x369   :  { %1578 = vst.msk [vmem:[#allocation2] sm:$0x2] %vm1061_vm5, %v1576_v54 }
 0x36c   :  { %v1580_v55 = vpop.permute.xlu1 %1579 }
 0x36d   :  { %1582 = vst.msk [vmem:[#allocation2 - $0x1] sm:$0x4] %vm1066_vm6, %v1580_v55 }
 0x370   :  { %v1584_v56 = vpop.permute.xlu1 %1583 }
 0x371   :  { %1586 = vst.msk [vmem:[#allocation2 - $0x2] sm:$0x8] %vm1071_vm7, %v1584_v56 }
 0x372   :  { %1890 = shalt.err (!%p1887_p4)
}
 0x373   :  { %s1891_s27 = scalar_lea.hbm %s2036_s2, 32 }
 0x374   :  { %p1892_p5 = scmp.ne.s32.totalorder %s2036_s2, %s1891_s27  ;;  %p1895_p6 = scmp.lt.u32.totalorder %s1891_s27, %s2036_s2 }
 0x376   :  { %p1897_p7 = pnand %p1895_p6, %p1892_p5 }
 0x378   :  { %1900 = shalt.err (!%p1897_p7)
}
 0x379   :  { %1596 = dma.vmem_to_hbm [thread:$0]  %s1594_s23, 32, %s2036_s2, [#allocation3]  }
 0x37a   :  { %1901 = dma.done.wait [#allocation3], 32  }
 0x37b   :  { %1902 = vsyncadd [#allocation3], 4294967264 }
 0x37c   :  { %1600 = vsyncpa [#allocation3], 1 }

</bundles_post_ra>
